<compile_context>
chip_gen: v6e
topology: v6e:2x2x1
jax: 0.10.0
libtpu: 0.0.40
codegen_flags: <defaults>
</compile_context>

<pallas_src>
import math

import jax
import jax.numpy as jnp
from jax.experimental import pallas as pl
from jax.experimental.pallas import tpu as pltpu

_LANE = 128
_SUBLANE = 8
# Keep each tensor's per-buffer pipeline tile at least this big when fusing many
# tensors into one call (otherwise the call becomes DMA-descriptor bound).
_MIN_PER_BUFFER_TILE = 512 * 1024


def _vmem_capacity_bytes():
    """Best-effort physical VMEM capacity query (conservative fallback)."""
    try:
        info = pltpu.get_tpu_info()
        cap = getattr(info, "vmem_capacity_bytes", None)
        if cap:
            return int(cap)
    except Exception:
        pass
    return 64 * 1024 * 1024  # v7x per-TC size: safe lower bound everywhere


def _vmem_budgets():
    """(total pipeline-buffer budget, vmem_limit_bytes) tuned per chip generation."""
    cap = _vmem_capacity_bytes()
    vmem_limit = min(cap // 2, 64 * 1024 * 1024)        # 64 MiB on v5e/v6e, 32 MiB on v7x
    pipeline_budget = min(24 * 1024 * 1024, vmem_limit // 2)  # 24 MiB / 16 MiB
    return pipeline_budget, vmem_limit


def _plan_layout(feature, itemsize, per_buffer_budget):
    """Factor a per-batch row of `feature` elements into a (R, L) view plus a row
    tile tR such that the (1, tR, L) block is lane-dense (L a multiple of 128 or the
    full row), respects the (8, 128) constraint, and fits `per_buffer_budget`."""
    fbytes = feature * itemsize
    if feature % _LANE != 0:
        # TODO(synk): split non-128-multiple features into a lane-dense chunk plus a
        # small remainder; for now a single (possibly masked-store) full-row block.
        return 1, feature, 1
    if fbytes <= per_buffer_budget:
        # Whole row as one wide lane-dense block (L >> 128 whenever it fits).
        return 1, feature, 1
    # Widest multiple-of-128 divisor L of `feature` such that a minimal (8, L) tile
    # still fits the per-buffer budget; the rest of the row is tiled along R.
    q = feature // _LANE
    max_d = min(q, per_buffer_budget // (_SUBLANE * _LANE * itemsize))
    L = _LANE
    for d in range(max(1, max_d), 0, -1):
        if q % d == 0:
            L = _LANE * d
            break
    R = feature // L
    budget_rows = per_buffer_budget // (L * itemsize)
    if R <= _SUBLANE or budget_rows >= R:
        tR = R  # full row extent (== array dim, always legal)
    else:
        tR = max(_SUBLANE, (budget_rows // _SUBLANE) * _SUBLANE)
    return R, L, tR


def _fused_reorder_call(n_tensors, b_out, b_in, R, L, tR, dtype, vmem_limit):
    """One pallas_call gather-reordering `n_tensors` states viewed as (B_in, R, L)."""
    grid_r = pl.cdiv(R, tR)

    def kernel(order_ref, *refs):
        # order_ref: scalar-prefetched (B_out,) int32 in SMEM, consumed by the
        # index_maps below (the gather itself is done by the auto-generated DMAs).
        del order_ref
        in_refs = refs[:n_tensors]
        out_refs = refs[n_tensors:]
        for src, dst in zip(in_refs, out_refs):
            dst[...] = src[...]

    block = (1, tR, L)
    in_specs = [
        # Data-dependent gather: source batch-block index comes from new_order[b].
        pl.BlockSpec(block, lambda b, r, order: (order[b], r, 0))
        for _ in range(n_tensors)
    ]
    out_specs = [
        pl.BlockSpec(block, lambda b, r, order: (b, r, 0))
        for _ in range(n_tensors)
    ]
    grid_spec = pltpu.PrefetchScalarGridSpec(
        num_scalar_prefetch=1,
        grid=(b_out, grid_r),
        in_specs=in_specs,
        out_specs=out_specs,
    )
    del b_in  # source rows are addressed via new_order; shape comes from the arrays
    bytes_accessed = 2 * n_tensors * b_out * R * L * dtype.itemsize  # read + write
    return pl.pallas_call(
        kernel,
        out_shape=tuple(
            jax.ShapeDtypeStruct((b_out, R, L), dtype) for _ in range(n_tensors)
        ),
        grid_spec=grid_spec,
        compiler_params=pltpu.CompilerParams(
            # Every (b, r) output block is written exactly once -> both axes are
            # safely parallel (megacore sharding of the batch loop where available).
            dimension_semantics=("parallel", "parallel"),
            vmem_limit_bytes=vmem_limit,
        ),
        cost_estimate=pl.CostEstimate(
            flops=0, transcendentals=0, bytes_accessed=bytes_accessed
        ),
    )


def reorder_incremental_state_pallas(states, new_order):
    """Pallas equivalent of {name: state.index_select(0, new_order)} for a dict of
    (B, ...) incremental-state tensors, fused into as few pallas_calls as possible."""
    if not states:
        return {}
    names = list(states.keys())
    b_in = int(states[names[0]].shape[0])
    b_out = int(new_order.shape[0])
    # Clamp indices so a bad new_order can never produce an out-of-bounds gather DMA
    # (torch.index_select would raise; clamping is documented as the safety net here).
    new_order = jnp.clip(new_order.astype(jnp.int32), 0, b_in - 1)

    pipeline_budget, vmem_limit = _vmem_budgets()
    # 2 in-flight buffers per input + 2 per output => 4 * n_tensors * tile_bytes.
    max_fused = max(1, pipeline_budget // (4 * _MIN_PER_BUFFER_TILE))

    # Group tensors that can share one fused call (same feature size + dtype).
    groups = {}
    for name in names:
        x = states[name]
        assert x.shape[0] == b_in, "all incremental states must share the batch dim"
        feature = int(math.prod(x.shape[1:]))
        key = (feature, jnp.dtype(x.dtype))
        groups.setdefault(key, []).append(name)

    out = {}
    for (feature, dtype), group_names in groups.items():
        for start in range(0, len(group_names), max_fused):
            chunk = group_names[start:start + max_fused]
            n = len(chunk)
            per_buffer = pipeline_budget // (4 * n)
            R, L, tR = _plan_layout(feature, dtype.itemsize, per_buffer)
            call = _fused_reorder_call(n, b_out, b_in, R, L, tR, dtype, vmem_limit)
            viewed = [states[nm].reshape(b_in, R, L) for nm in chunk]
            results = call(new_order, *viewed)
            if not isinstance(results, (tuple, list)):
                results = (results,)
            for nm, res in zip(chunk, results):
                out[nm] = res.reshape((b_out,) + states[nm].shape[1:])
    return out


class Seq2SeqEncoder:
    """JAX mirror of the PyTorch abstract encoder base class."""

    def __init__(self, dictionary):
        self.dictionary = dictionary

    def forward(self, src_tokens, src_lengths):
        # TODO(synk): abstract in the reference (raises NotImplementedError).
        raise NotImplementedError


class Seq2SeqDecoder:
    """JAX/Pallas mirror of the PyTorch abstract decoder base class."""

    def __init__(self, dictionary):
        self.dictionary = dictionary
        # Incremental state registry: name -> (B, ...) array (e.g. cached K/V).
        self.incremental_state = {}

    def forward(self, tgt_inputs, encoder_out):
        # TODO(synk): abstract in the reference (raises NotImplementedError);
        # there is no forward compute to translate.
        raise NotImplementedError

    def reorder_incremental_state(self, incremental_state, new_order):
        """Reorder every cached incremental-state tensor along the batch dim
        according to `new_order` (beam-search reordering), fused on TPU."""
        return reorder_incremental_state_pallas(incremental_state, new_order)


class Seq2SeqModel:
    """JAX mirror of the PyTorch Seq2SeqModel wrapper."""

    def __init__(self, encoder, decoder):
        assert isinstance(encoder, Seq2SeqEncoder)
        assert isinstance(decoder, Seq2SeqDecoder)
        self.encoder = encoder
        self.decoder = decoder

    def forward(self, src_tokens, src_lengths, tgt_inputs):
        encoder_out = self.encoder.forward(src_tokens, src_lengths)
        return self.decoder.forward(tgt_inputs, encoder_out)


if __name__ == "__main__":
    key = jax.random.PRNGKey(0)
    k1, k2, k3, k4, k_order = jax.random.split(key, 5)

    # Small, deterministic example incremental state (e.g. cached attention K/V).
    B, S, H = 8, 8, 128
    state_k = jax.random.normal(k1, (B, S, H), dtype=jnp.float32)
    state_v = jax.random.normal(k2, (B, S, H), dtype=jnp.float32)
    # Different dtype exercises the grouping path (separate fused call).
    state_cross = jax.random.normal(k3, (B, S, H), dtype=jnp.float32).astype(jnp.bfloat16)
    # Non-128-multiple feature exercises the masked-lane fallback path.
    state_small = jax.random.normal(k4, (B, 3, 40), dtype=jnp.float32)
    # Beam-search style reordering (permutation with repeats allowed).
    new_order = jax.random.randint(k_order, (B,), 0, B, dtype=jnp.int32)

    decoder = Seq2SeqDecoder(dictionary=None)
    decoder.incremental_state = {
        "attn_k": state_k,
        "attn_v": state_v,
        "cross_attn_k": state_cross,
        "attn_bias": state_small,
    }

    reordered = decoder.reorder_incremental_state(decoder.incremental_state, new_order)
    jax.block_until_ready(reordered)

    # Reference check against plain JAX gather (== torch.index_select(., 0, new_order)).
    for name, value in decoder.incremental_state.items():
        ref = jnp.take(value, new_order, axis=0)
        assert reordered[name].shape == value.shape
        assert reordered[name].dtype == value.dtype
        assert jnp.array_equal(reordered[name], ref), name

    print("KERNEL_OK")
</pallas_src>

<mosaic_0001>
module attributes {stable_mosaic.version = 11 : i64} {
  func.func @kernel(%arg0: i32, %arg1: i32, %arg2: memref<8xi32, #tpu.memory_space<smem>>, %arg3: memref<1x1x1024xf32, #tpu.memory_space<vmem>>, %arg4: memref<1x1x1024xf32, #tpu.memory_space<vmem>>, %arg5: memref<1x1x1024xf32, #tpu.memory_space<vmem>>, %arg6: memref<1x1x1024xf32, #tpu.memory_space<vmem>>) attributes {dimension_semantics = [#tpu.dimension_semantics<parallel>, #tpu.dimension_semantics<parallel>], iteration_bounds = array<i64: 8, 1>, scalar_prefetch = 1 : i64, scratch_operands = 0 : i64, tpu.core_type = #tpu.core_type<tc>, window_params = [{transform_indices = @transform_0, window_bounds = array<i64: 1, 1, 1024>}, {transform_indices = @transform_1, window_bounds = array<i64: 1, 1, 1024>}, {transform_indices = @transform_2, window_bounds = array<i64: 1, 1, 1024>}, {transform_indices = @transform_3, window_bounds = array<i64: 1, 1, 1024>}]} {
    %c0 = arith.constant 0 : index
    %c0_0 = arith.constant 0 : index
    %c0_1 = arith.constant 0 : index
    %0 = vector.load %arg3[%c0, %c0_0, %c0_1] : memref<1x1x1024xf32, #tpu.memory_space<vmem>>, vector<1x1x1024xf32>
    %c0_2 = arith.constant 0 : index
    %c0_3 = arith.constant 0 : index
    %c0_4 = arith.constant 0 : index
    %1 = vector.load %arg5[%c0_2, %c0_3, %c0_4] : memref<1x1x1024xf32, #tpu.memory_space<vmem>>, vector<1x1x1024xf32>
    tpu.vector_store %arg5[%c0_2, %c0_3, %c0_4], %0 {strides = array<i32>} : memref<1x1x1024xf32, #tpu.memory_space<vmem>>, vector<1x1x1024xf32>,
    %c0_5 = arith.constant 0 : index
    %c0_6 = arith.constant 0 : index
    %c0_7 = arith.constant 0 : index
    %2 = vector.load %arg4[%c0_5, %c0_6, %c0_7] : memref<1x1x1024xf32, #tpu.memory_space<vmem>>, vector<1x1x1024xf32>
    %c0_8 = arith.constant 0 : index
    %c0_9 = arith.constant 0 : index
    %c0_10 = arith.constant 0 : index
    %3 = vector.load %arg6[%c0_8, %c0_9, %c0_10] : memref<1x1x1024xf32, #tpu.memory_space<vmem>>, vector<1x1x1024xf32>
    tpu.vector_store %arg6[%c0_8, %c0_9, %c0_10], %2 {strides = array<i32>} : memref<1x1x1024xf32, #tpu.memory_space<vmem>>, vector<1x1x1024xf32>,
    return
  }
  func.func @transform_0(%arg0: i32, %arg1: i32, %arg2: memref<8xi32, #tpu.memory_space<smem>>) -> (i32, i32, i32) {
    %0 = arith.index_cast %arg0 : i32 to index
    %1 = memref.load %arg2[%0] : memref<8xi32, #tpu.memory_space<smem>>
    %c0_i32 = arith.constant 0 : i32
    %c0_i32_0 = arith.constant 0 : i32
    return %1, %arg1, %c0_i32 : i32, i32, i32
  }
  func.func @transform_1(%arg0: i32, %arg1: i32, %arg2: memref<8xi32, #tpu.memory_space<smem>>) -> (i32, i32, i32) {
    %0 = arith.index_cast %arg0 : i32 to index
    %1 = memref.load %arg2[%0] : memref<8xi32, #tpu.memory_space<smem>>
    %c0_i32 = arith.constant 0 : i32
    %c0_i32_0 = arith.constant 0 : i32
    return %1, %arg1, %c0_i32 : i32, i32, i32
  }
  func.func @transform_2(%arg0: i32, %arg1: i32, %arg2: memref<8xi32, #tpu.memory_space<smem>>) -> (i32, i32, i32) {
    %c0_i32 = arith.constant 0 : i32
    %c0_i32_0 = arith.constant 0 : i32
    return %arg0, %arg1, %c0_i32 : i32, i32, i32
  }
  func.func @transform_3(%arg0: i32, %arg1: i32, %arg2: memref<8xi32, #tpu.memory_space<smem>>) -> (i32, i32, i32) {
    %c0_i32 = arith.constant 0 : i32
    %c0_i32_0 = arith.constant 0 : i32
    return %arg0, %arg1, %c0_i32 : i32, i32, i32
  }
}

</mosaic_0001>

<bundles_post_ra>
// kernel: tpu_custom_call.1
= control target key start
LH: loop header
LB: loop body
LE: loop exit
PB: predicated region body
PF: predicated region fallthrough
CT: control target
= control target key end

     0   :  { %s846_s15 = smov [#allocation3]   ;;  %s1201_s0 = inlined_call_operand.hbm [shape: s32[8], index: 0, kind: input, shape index: {}]   ;;  %s1202_s1 = inlined_call_operand.hbm [shape: f32[8,1,1024], index: 1, kind: input, shape index: {}]   ;;  %s1203_s2 = inlined_call_operand.hbm [shape: f32[8,1,1024], index: 2, kind: input, shape index: {}]   ;;  %s1204_s3 = inlined_call_operand.hbm [shape: f32[8,1,1024], index: 3, kind: output, shape index: {0}]   ;;  %s1205_s4 = inlined_call_operand.hbm [shape: f32[8,1,1024], index: 4, kind: output, shape index: {1}]  }
   0x1   :  { %1218 = sst [smem:[#allocation27_spill]] %s1204_s3 }
   0x2   :  { %1219 = sst [smem:[#allocation28_spill]] %s1205_s4 }
   0x3   :  { %11 = dma.hbm_to_smem %s1201_s0, 16, %s846_s15, [#allocation2] }
   0x4   :  { %780 = dma.done.wait [#allocation2], 16 }
   0x5   :  { %781 = vsyncadd [#allocation2], 4294967280 }
   0x6   :  { %13 = sfence }
   0x7   :  { %14 = vsyncpa [#allocation5], 0 }
   0x8   :  { %16 = vsyncpa [#allocation5 + $0x1], 0 }
   0x9   :  { %17 = vsyncpa [#allocation8], 0 }
   0xa   :  { %19 = vsyncpa [#allocation8 + $0x1], 0 }
   0xb   :  { %20 = vsyncpa [#allocation6], 0 }
   0xc   :  { %22 = vsyncpa [#allocation6 + $0x1], 0 }
   0xd   :  { %23 = vsyncpa [#allocation11], 0 }
   0xe   :  { %25 = vsyncpa [#allocation11 + $0x1], 0  ;;  %s879_s18 = smov 0   ;;  %s881_s19 = smov 0  }
   0xf   :  { %s883_s20 = smov 0   ;;  %s885_s21 = smov 0  }
  0x10   :  { %s887_s0 = smov 0   ;;  %s889_s22 = smov 0  }
  0x11   :  { %s891_s23 = smov 0   ;;  %s893_s24 = smov 0  }
  0x12   :  { %s895_s25 = smov 0   ;;  %s897_s26 = smov 0  }
  0x13   :  { %s899_s27 = smov 0   ;;  %s901_s28 = smov 0  }
  0x14 LB: > { %1220 = sst [smem:[#allocation21_spill]] %s800_s18  ;;  %s460_s29 = sadd.s32 4294967295, %s844_s28   ;;  %s844_s28 = sphi %s901_s28, %s31_s28   ;;  %s840_s27 = sphi %s899_s27, %s1262_s27   ;;  %s836_s26 = sphi %s897_s26, %s1261_s26   ;;  %s832_s25 = sphi %s895_s25, %s1253_s25   ;;  %s828_s24 = sphi %s893_s24, %s1260_s24   ;;  %s824_s23 = sphi %s891_s23, %s1259_s23   ;;  %s820_s22 = sphi %s889_s22, %s1258_s22   ;;  %s816_s0 = sphi %s887_s0, %s1257_s0   ;;  %s812_s21 = sphi %s885_s21, %s1256_s21   ;;  %s808_s20 = sphi %s883_s20, %s1251_s20   ;;  %s804_s19 = sphi %s881_s19, %s1255_s19   ;;  %s800_s18 = sphi %s879_s18, %s1254_s18  }
  0x15   : > { %1221 = sst [smem:[#allocation22_spill]] %s808_s20  ;;  %s461_s30 = sadd.s32 4294967294, %s844_s28  }
  0x16   : > { %1222 = sst [smem:[#allocation23_spill]] %s832_s25  ;;  %s43_s5 = sadd.s32 1, %s840_s27 }
  0x17   : > { %s47_s6 = sld [smem:[#allocation3 + %s840_s27]]  ;;  %p45_p0 = scmp.ge.s32.totalorder %s43_s5, 8 }
  0x18   : > { %s54_s7 = sadd.s32 1, %s832_s25  ;;  %p61_p1 = scmp.ne.s32.totalorder %s832_s25, %s828_s24 }
  0x19   : > { %p1213_p2 = scmp.eq.s32.totalorder %s844_s28, 0  ;;  %s1264_s5 = smov (%p45_p0, %s43_s5), 0 }
  0x1a   : > { %p67_p4 = scmp.ne.s32.totalorder %s828_s24, %s824_s23  ;;  %s48_s9 = sld [smem:[#allocation3 + %s1264_s5]] }
  0x1b   : > { %p949_p3 = por %p1213_p2, %p61_p1  ;;  %p955_p5 = scmp.eq.s32.totalorder %s460_s29, 0 }
  0x1c   : > { %s107_s11 = ssub.s32 %s840_s27, %s1264_s5  ;;  %s112_s12 = sadd.s32 1, %s808_s20 }
  0x1d   : > { %s1224_s10 = scalar_select %p955_p5, 1, 0 }
  0x1e   : > { %p964_p6 = por %p955_p5, %p67_p4  ;;  %p110_p7 = scmp.eq.s32.totalorder %s107_s11, 0 }
  0x1f   : > { %p122_p8 = scmp.ne.s32.totalorder %s808_s20, %s804_s19  ;;  %p123_p9 = scmp.eq.s32.totalorder %s460_s29, 7 }
  0x20   : > { %s1225_s13 = scalar_select %p964_p6, 1, 0 }
  0x21   : > { %s971_s14 = scalar_select %p110_p7, %s808_s20, %s112_s12  }
  0x22   : > { %p973_p10 = por %p123_p9, %p122_p8  ;;  %p128_p11 = scmp.ne.s32.totalorder %s804_s19, %s800_s18 }
  0x23   : > { %1226 = sst [smem:[#allocation24_spill]] %s971_s14  ;;  %s49_s16 = ssub.s32 %s47_s6, %s48_s9 }
  0x24   : > { %s1227_s15 = scalar_select %p973_p10, 1, 0 }
  0x25   : > { %p129_p12 = scmp.eq.s32.totalorder %s461_s30, 7  ;;  %p52_p13 = scmp.eq.s32.totalorder %s49_s16, 0 }
  0x26   : > { %p1212_p1 = scmp.lt.s32.totalorder %s844_s28, 8  ;;  %s177_s29 = sand.u32 1, %s832_s25  }
  0x27   : > { %p979_p0 = por %p129_p12, %p128_p11  ;;  %s464_s6 = sshll.u32 %s177_s29, 3 }
  0x28   : > { %s985_s23 = scalar_select %p52_p13, %s832_s25, %s54_s7  }
  0x29   : > { %s1228_s17 = scalar_select %p979_p0, 1, 0 }
  0x2a   : > { %1230 = sst [smem:[#allocation26_spill]] %s985_s23  ;;  %p992_p4 = pnand %p1212_p1, %p949_p3 }
  0x2b   : > { %1229 = sst [smem:[#allocation25_spill]] %s1228_s17  ;;  %p470_p7 = scmp.ge.s32.totalorder %s844_s28, 1 }
  0x2c   : > { %s487_s30 = scalar_select %p949_p3, [#allocation3], [#allocation12] }
  0x2d   : > { %s488_s9 = scalar_select %p949_p3, %s840_s27, 0 }
  0x2e   : > { %s1266_s30 = smov (!%p1212_p1, %s487_s30), [#allocation14]  ;;  %s181_s12 = scalar_lea.vmem [#allocation4], %s464_s6 }
  0x2f   : > { %s1268_s9 = smov (!%p1212_p1, %s488_s9), 0  ;;  %s192_s16 = sshll.u32 %s181_s12, 4  ;;  %s1007_s16 = int_to_ptr.vmem [resolvable:$true] %s192_s16 }
  0x30   : > { %s182_s7 = sld [smem:[%s1266_s30 + %s1268_s9]]  ;;  %p219_p8 = scmp.lt.s32.totalorder %s844_s28, 9 }
  0x31   : > { %s1014_s25 = sld [smem:[#allocation3 + %s840_s27]]  ;;  %s178_s30 = scalar_lea.sflag [#allocation5], %s177_s29 }
  0x32   : > { %p1009_p9 = pnand %p470_p7, %p219_p8  ;;  %s1017_s14 = sld [smem:[#allocation3 + %s1264_s5]] }
  0x33   : > { %p626_p12 = pneg %p992_p4  ;;  %s629_s4 = scalar_lea.hbm %s1202_s1, 1024 }
  0x34   : > { %s1232_s23 = scalar_select %p1009_p9, 1, 0 }
  0x36   : > { %s483_s8 = sshll.u32 %s182_s7, 7 }
  0x37   : > { %s190_s18 = scalar_lea.hbm %s1202_s1, %s483_s8 }
  0x38   : > { %s624_s6 = scalar_lea.hbm %s190_s18, 128  ;;  %p630_p8 = scmp.lt.s32.totalorder %s190_s18, %s1202_s1 }
  0x39   : > { %p625_p11 = scmp.ne.s32.totalorder %s190_s18, %s624_s6  ;;  %p631_p1 = scmp.lt.s32.totalorder %s629_s4, %s624_s6 }
  0x3b   : > { %p627_p13 = pnand %p626_p12, %p625_p11  ;;  %p632_p2 = por %p631_p1, %p630_p8 }
  0x3d   : > { %p628_p7 = pneg %p627_p13 }
  0x3f   : > { %p633_p0 = pnand %p632_p2, %p628_p7 }
  0x41   : > { %636 = shalt.err (!%p633_p0)
}
  0x42   : > { %s637_s20 = scalar_lea.vmem %s1007_s16, 128  ;;  %s847_s17 = smov [#allocation4]  }
  0x43   : > { %p638_p3 = scmp.ne.s32.totalorder %s1007_s16, %s637_s20  ;;  %s642_s29 = sshll.u32 %s847_s17, 4  ;;  %s643_s29 = int_to_ptr.vmem [resolvable:$false] %s642_s29 }
  0x44   : > { %s644_s8 = scalar_lea.vmem %s643_s29, 256  ;;  %p645_p13 = scmp.lt.s32.totalorder %s1007_s16, %s643_s29 }
  0x45   : > { %p640_p10 = pnand %p638_p3, %p626_p12  ;;  %p646_p6 = scmp.lt.s32.totalorder %s644_s8, %s637_s20 }
  0x47   : > { %p641_p11 = pneg %p640_p10  ;;  %p647_p9 = por %p646_p6, %p645_p13 }
  0x49   : > { %p648_p5 = pnand %p647_p9, %p641_p11 }
  0x4b   : > { %651 = shalt.err (!%p648_p5)
}
  0x4c   : > { %504 = dma.hbm_to_vmem [thread:$0]  (!%p992_p4), %s190_s18, 128, %s1007_s16, %s178_s30  }
  0x4d   : > { %p97_p2 = scmp.ne.s32.totalorder %s816_s0, %s812_s21  ;;  %p1233_p5 = scmp.eq.s32.totalorder %s844_s28, 0 }
  0x4e   : > { %p1234_p6 = scmp.ne.s32.totalorder %s820_s22, %s816_s0  ;;  %s199_s3 = sand.u32 1, %s820_s22  }
  0x4f   : > { %p1235_p0 = scmp.ne.s32.totalorder %s1224_s10, 0  ;;  %s79_s11 = ssub.s32 %s1014_s25, %s1017_s14 }
  0x50   : > { %p93_p10 = por %p1234_p6, %p1233_p5  ;;  %s84_s6 = sadd.s32 1, %s820_s22 }
  0x51   : > { %p1048_p1 = por %p97_p2, %p1235_p0  ;;  %p82_p9 = scmp.eq.s32.totalorder %s79_s11, 0 }
  0x52   : > { %s467_s9 = sshll.u32 %s199_s3, 3  ;;  %p1237_p3 = scmp.lt.s32.totalorder %s844_s28, 8 }
  0x53   : > { %s1236_s4 = scalar_select %p1048_p1, 1, 0 }
  0x54   : > { %s490_s12 = scalar_select %p93_p10, [#allocation3], [#allocation13] }
  0x55   : > { %s1056_s7 = scalar_select %p82_p9, %s820_s22, %s84_s6  }
  0x56   : > { %s491_s20 = scalar_select %p93_p10, %s840_s27, 0 }
  0x57   : > { %s1270_s12 = smov (!%p1237_p3, %s490_s12), [#allocation15]  ;;  %p1238_p4 = pmov %p1237_p3 }
  0x58   : > { %p1239_p12 = pmov %p1237_p3  ;;  %s203_s10 = scalar_lea.vmem [#allocation7], %s467_s9 }
  0x59   : > { %s1272_s20 = smov (!%p1238_p4, %s491_s20), 0  ;;  %s214_s25 = sshll.u32 %s203_s10, 4  ;;  %s1069_s25 = int_to_ptr.vmem [resolvable:$true] %s214_s25 }
  0x5a   : > { %p1065_p7 = pnand %p1239_p12, %p93_p10  ;;  %s204_s21 = sld [smem:[%s1270_s12 + %s1272_s20]] }
  0x5b   : > { %s200_s29 = scalar_lea.sflag [#allocation8], %s199_s3  ;;  %s657_s12 = scalar_lea.hbm %s1203_s2, 1024 }
  0x5c   : > { %p654_p11 = pneg %p1065_p7 }
  0x60   : > { %s484_s14 = sshll.u32 %s204_s21, 7 }
  0x61   : > { %s212_s17 = scalar_lea.hbm %s1203_s2, %s484_s14 }
  0x62   : > { %s652_s8 = scalar_lea.hbm %s212_s17, 128  ;;  %p658_p5 = scmp.lt.s32.totalorder %s212_s17, %s1203_s2 }
  0x63   : > { %p653_p8 = scmp.ne.s32.totalorder %s212_s17, %s652_s8  ;;  %p659_p6 = scmp.lt.s32.totalorder %s657_s12, %s652_s8 }
  0x65   : > { %p655_p13 = pnand %p654_p11, %p653_p8  ;;  %p660_p10 = por %p659_p6, %p658_p5 }
  0x67   : > { %p656_p2 = pneg %p655_p13 }
  0x69   : > { %p661_p0 = pnand %p660_p10, %p656_p2 }
  0x6b   : > { %664 = shalt.err (!%p661_p0)
}
  0x6c   : > { %s665_s3 = scalar_lea.vmem %s1069_s25, 128  ;;  %s848_s21 = smov [#allocation7]  }
  0x6d   : > { %p666_p9 = scmp.ne.s32.totalorder %s1069_s25, %s665_s3  ;;  %s670_s10 = sshll.u32 %s848_s21, 4  ;;  %s671_s10 = int_to_ptr.vmem [resolvable:$false] %s670_s10 }
  0x6e   : > { %s672_s14 = scalar_lea.vmem %s671_s10, 256  ;;  %p673_p12 = scmp.lt.s32.totalorder %s1069_s25, %s671_s10 }
  0x6f   : > { %p668_p3 = pnand %p666_p9, %p654_p11  ;;  %p674_p8 = scmp.lt.s32.totalorder %s672_s14, %s665_s3 }
  0x71   : > { %p669_p4 = pneg %p668_p3  ;;  %p675_p13 = por %p674_p8, %p673_p12 }
  0x73   : > { %p676_p1 = pnand %p675_p13, %p669_p4 }
  0x75   : > { %679 = shalt.err (!%p676_p1)
}
  0x76   : > { %509 = dma.hbm_to_vmem [thread:$0]  (!%p1065_p7), %s212_s17, 128, %s1069_s25, %s200_s29  }
  0x77   : > { %p1241_p2 = scmp.ne.s32.totalorder %s1232_s23, 0 }
  0x78   : > { %s225_s16 = sand.u32 (!%p1241_p2), 1, %s828_s24   ;;  %p1242_p11 = scmp.ne.s32.totalorder (!%p1241_p2), %s1225_s13, 0 }
  0x79   : > { %223 = sbr.rel (%p1241_p2) target bundleno = 180 (0xb4), region = 28  ;;  %s471_s30 = sshll.u32 (!%p1241_p2), %s225_s16, 3 }
  0x7a   : > { %s226_s8 = scalar_lea.sflag (!%p1241_p2), [#allocation5], %s225_s16  ;;  %s229_s11 = scalar_lea.vmem (!%p1241_p2), [#allocation4], %s471_s30 }
  0x7e   : > { %783 = dma.done.wait (%p1242_p11), %s226_s8, 128  }
  0x7f   : > { %785 = vsyncadd (%p1242_p11), %s226_s8, 4294967168  ;;  %s234_s6 = sand.u32 1, %s816_s0   ;;  %p1243_p1 = scmp.ne.s32.totalorder %s1236_s4, 0 }
  0x80   : > { %s472_s18 = sshll.u32 %s234_s6, 3  ;;  %s235_s12 = scalar_lea.sflag [#allocation8], %s234_s6 }
  0x81   : > { %s238_s25 = scalar_lea.vmem [#allocation7], %s472_s18 }
  0x82   : > { %787 = dma.done.wait (%p1243_p1), %s235_s12, 128  }
  0x83   : > { %789 = vsyncadd (%p1243_p1), %s235_s12, 4294967168  ;;  %s1101_s23 = sand.u32 1, %s804_s19   ;;  %s485_s13 = sshll.u32 %s836_s26, 7  ;;  %v273_v0 = vld [vmem:[%s229_s11] sm:$0xff]  ;;  %v275_v1 = vld [vmem:[%s238_s25] sm:$0xff] }
  0x84   : > { %s473_s17 = sshll.u32 %s1101_s23, 3  ;;  %s1244_s10 = sld [smem:[#allocation27_spill]] }
  0x85   : > { %s263_s29 = scalar_lea.vmem [#allocation9], %s473_s17  ;;  %s270_s20 = scalar_lea.vmem [#allocation10], %s473_s17 }
  0x86   : > { %s299_s9 = sshll.u32 %s263_s29, 4  ;;  %s315_s3 = sshll.u32 %s270_s20, 4  ;;  %274 = vst [vmem:[%s263_s29] sm:$0xff] %v273_v0  ;;  %276 = vst [vmem:[%s270_s20] sm:$0xff] %v275_v1  ;;  %s1105_s9 = int_to_ptr.vmem [resolvable:$true] %s299_s9  ;;  %s1107_s3 = int_to_ptr.vmem [resolvable:$true] %s315_s3 }
  0x87   : > { %s1245_s30 = sld [smem:[#allocation28_spill]]  ;;  %s278_s6 = scalar_lea.sflag [#allocation6], %s1101_s23 }
  0x88   : > { %s680_s18 = scalar_lea.vmem %s1105_s9, 128  ;;  %p1246_p5 = scmp.ne.s32.totalorder %s1227_s15, 0 }
  0x89   : > { %p681_p7 = scmp.ne.s32.totalorder %s1105_s9, %s680_s18  ;;  %s849_s12 = smov [#allocation9]  }
  0x8a   : > { %s1112_s14 = scalar_lea.hbm %s1244_s10, %s485_s13  ;;  %s684_s17 = sshll.u32 %s849_s12, 4  ;;  %s685_s17 = int_to_ptr.vmem [resolvable:$false] %s684_s17 }
  0x8b   : > { %p682_p6 = pnand %p681_p7, %p1246_p5  ;;  %s686_s4 = scalar_lea.vmem %s685_s17, 256 }
  0x8c   : > { %p687_p0 = scmp.lt.s32.totalorder %s1105_s9, %s685_s17  ;;  %p688_p9 = scmp.lt.s32.totalorder %s686_s4, %s680_s18 }
  0x8d   : > { %s1117_s8 = scalar_lea.hbm %s1245_s30, %s485_s13  ;;  %p683_p10 = pneg %p682_p6 }
  0x8e   : > { %p689_p3 = por %p688_p9, %p687_p0 }
  0x90   : > { %p690_p4 = pnand %p689_p3, %p683_p10 }
  0x92   : > { %693 = shalt.err (!%p690_p4)
}
  0x93   : > { %s694_s11 = scalar_lea.hbm %s1112_s14, 128  ;;  %s698_s29 = scalar_lea.hbm %s1244_s10, 1024 }
  0x94   : > { %p695_p12 = scmp.ne.s32.totalorder %s1112_s14, %s694_s11  ;;  %p699_p2 = scmp.lt.s32.totalorder %s1112_s14, %s1244_s10 }
  0x95   : > { %p700_p11 = scmp.lt.s32.totalorder %s698_s29, %s694_s11 }
  0x96   : > { %p696_p8 = pnand %p695_p12, %p1246_p5 }
  0x97   : > { %p701_p1 = por %p700_p11, %p699_p2 }
  0x98   : > { %p697_p13 = pneg %p696_p8 }
  0x9a   : > { %p702_p7 = pnand %p701_p1, %p697_p13 }
  0x9c   : > { %705 = shalt.err (!%p702_p7)
}
  0x9d   : > { %495 = dma.vmem_to_hbm [thread:$0]  (%p1246_p5), %s1105_s9, 128, %s1112_s14, %s278_s6  }
  0x9e   : > { %s283_s26 = scalar_lea.sflag [#allocation11], %s1101_s23  ;;  %s706_s16 = scalar_lea.vmem %s1107_s3, 128 }
  0x9f   : > { %p707_p6 = scmp.ne.s32.totalorder %s1107_s3, %s706_s16  ;;  %s850_s18 = smov [#allocation10]  }
  0xa0   : > { %s710_s12 = sshll.u32 %s850_s18, 4  ;;  %s711_s12 = int_to_ptr.vmem [resolvable:$false] %s710_s12 }
  0xa1   : > { %p708_p10 = pnand %p707_p6, %p1246_p5  ;;  %s712_s17 = scalar_lea.vmem %s711_s12, 256 }
  0xa2   : > { %p713_p9 = scmp.lt.s32.totalorder %s1107_s3, %s711_s12  ;;  %p714_p3 = scmp.lt.s32.totalorder %s712_s17, %s706_s16 }
  0xa3   : > { %p709_p0 = pneg %p708_p10 }
  0xa4   : > { %p715_p4 = por %p714_p3, %p713_p9 }
  0xa6   : > { %p716_p12 = pnand %p715_p4, %p709_p0 }
  0xa8   : > { %719 = shalt.err (!%p716_p12)
}
  0xa9   : > { %s720_s9 = scalar_lea.hbm %s1117_s8, 128  ;;  %s724_s6 = scalar_lea.hbm %s1245_s30, 1024 }
  0xaa   : > { %p721_p8 = scmp.ne.s32.totalorder %s1117_s8, %s720_s9  ;;  %p725_p11 = scmp.lt.s32.totalorder %s1117_s8, %s1245_s30 }
  0xab   : > { %p726_p1 = scmp.lt.s32.totalorder %s724_s6, %s720_s9 }
  0xac   : > { %p722_p13 = pnand %p721_p8, %p1246_p5 }
  0xad   : > { %p727_p7 = por %p726_p1, %p725_p11 }
  0xae   : > { %p723_p2 = pneg %p722_p13 }
  0xb0   : > { %p728_p6 = pnand %p727_p7, %p723_p2 }
  0xb2   : > { %731 = shalt.err (!%p728_p6)
}
  0xb3   : > { %496 = dma.vmem_to_hbm [thread:$0]  (%p1246_p5), %s1107_s3, 128, %s1117_s8, %s283_s26  }
  0xb4 PF: > { %s1247_s25 = sld [smem:[#allocation21_spill]]  ;;  %p518_p10 = scmp.ge.s32.totalorder %s844_s28, 2 }
  0xb5   : > { %s1248_s13 = sld [smem:[#allocation25_spill]] }
  0xba   : > { %s327_s29 = sand.u32 1, %s1247_s25  }
  0xbb   : > { %p1249_p0 = scmp.ne.s32.totalorder %s1248_s13, 0  ;;  %s328_s20 = scalar_lea.sflag [#allocation6], %s327_s29 }
  0xbd   : > { %p511_p9 = pnand %p518_p10, %p1249_p0 }
  0xbf   : > { %p512_p3 = pneg %p511_p9 }
  0xc1   : > { %791 = dma.done.wait (%p512_p3), %s328_s20, 128  }
  0xc2   : > { %793 = vsyncadd (%p512_p3), %s328_s20, 4294967168  ;;  %s337_s21 = scalar_lea.sflag [#allocation11], %s327_s29 }
  0xc3   : > { %795 = dma.done.wait (%p512_p3), %s337_s21, 128  }
  0xc4   : > { %797 = vsyncadd (%p512_p3), %s337_s21, 4294967168  ;;  %s31_s28 = sadd.s32 1, %s844_s28   ;;  %s1250_s15 = sld [smem:[#allocation22_spill]] }
  0xc5   : > { %p28_p4 = scmp.ge.s32.totalorder %s31_s28, 10   ;;  %s1251_s20 = sld [smem:[#allocation24_spill]] }
  0xc6   : > { %s1252_s3 = sld [smem:[#allocation23_spill]]  ;;  %s1254_s18 = smov %s804_s19 }
  0xc7   : > { %s1253_s25 = sld [smem:[#allocation26_spill]]  ;;  %s1256_s21 = smov %s816_s0 }
  0xc8   : > { %s1257_s0 = smov %s820_s22  ;;  %s1258_s22 = smov %s1056_s7 }
  0xc9   : > { %s1259_s23 = smov %s828_s24  ;;  %s1261_s26 = smov %s840_s27 }
  0xca   : > { %s1255_s19 = smov %s1250_s15  ;;  %s1262_s27 = smov %s1264_s5 }
  0xcb   :  { %30 = sbr.rel (!%p28_p4) target bundleno = 20 (0x14), region = 103 }
  0xcc   : > { %s1260_s24 = smov %s1252_s3 }
  0xd0   :  { %342 = vsyncpa [#allocation5], 1 }
  0xd1   :  { %344 = vsyncpa [#allocation5 + $0x1], 1 }
  0xd2   :  { %345 = vsyncpa [#allocation8], 1 }
  0xd3   :  { %347 = vsyncpa [#allocation8 + $0x1], 1 }
  0xd4   :  { %348 = vsyncpa [#allocation6], 1 }
  0xd5   :  { %350 = vsyncpa [#allocation6 + $0x1], 1 }
  0xd6   :  { %351 = vsyncpa [#allocation11], 1 }
  0xd7   :  { %353 = vsyncpa [#allocation11 + $0x1], 1 }

</bundles_post_ra>
